<compile_context>
chip_gen: v6e
topology: v6e:2x2x1
jax: 0.10.0
libtpu: 0.0.40
codegen_flags: <defaults>
</compile_context>

<pallas_src>
import functools

import jax
import jax.numpy as jnp
from jax.experimental import pallas as pl
from jax.experimental.pallas import tpu as pltpu

KERNEL_VARIANCE = 1.0
KERNEL_LENGTHSCALE = 1.5
JITTER = 1e-6
_BIG_SQDIST = 1e9           # padded z rows: exp(-0.5 * BIG) == 0 exactly in f32


def _round_up(x, m):
    return ((x + m - 1) // m) * m


def _device_tuning():
    """(vmem_limit_bytes, tn_cap, split_for_two_cores) per TPU generation."""
    kind = jax.devices()[0].device_kind.lower()
    if ("v5" in kind) or ("v6" in kind):
        # 128 MiB physical VMEM, 1 TensorCore: big lane tiles amortize per-step overhead.
        return 96 * 1024 * 1024, 1024, False
    # v7x (64 MiB VMEM, 2 TCs) and unknown parts: conservative VMEM, feed both cores.
    return 48 * 1024 * 1024, 512, True


# --------------------------------------------------------------------------
# Fused kernel, per N-tile (tn lanes wide):
#   kzx  = exp(-0.5 * ||z/l - x/l||^2)                     (Mp, tn)   MXU + EUP
#   S    = stacked_lhs @ kzx                               (R,  tn)   one MXU matmul
#          rows [0:Lp)      = v * q_mu  @ Linv   -> mean
#          rows [Lp:Lp+Mp)  = v^2 * Linv^T Linv  -> sum_m A^2 via sum(kzx * S_G)
#          rows [Lp+Mp:)    = v * q_sqrt^T @ Linv -> lta   (L blocks of Mp rows)
#   var[l, n] = variance - sum_m A[m,n]^2 + sum_m lta[l,m,n]^2   (diag Kxx == variance)
# --------------------------------------------------------------------------
def _svgp_fused_kernel(x_ref, z_ref, zsq_ref, lhs_ref, mean_ref, var_ref, *,
                       variance, inv_lengthscale, num_latent, lp, mp):
    x = x_ref[...] * inv_lengthscale                                  # (D, tn)
    xsq = jnp.sum(x * x, axis=0, keepdims=True)                       # (1, tn)
    zx = jnp.dot(z_ref[...], x, preferred_element_type=jnp.float32)   # (Mp, tn)
    sq = jnp.maximum(zsq_ref[...] + xsq - 2.0 * zx, 0.0)
    kzx = jnp.exp(-0.5 * sq)                                          # (Mp, tn)

    stacked = jnp.dot(lhs_ref[...], kzx,
                      preferred_element_type=jnp.float32)             # (R, tn)

    mean_ref[...] = stacked[0:num_latent, :]                          # (L, tn)

    g_kzx = stacked[lp:lp + mp, :]                                    # (Mp, tn)
    sum_a2 = jnp.sum(kzx * g_kzx, axis=0, keepdims=True)              # (1, tn)

    lta = stacked[lp + mp:, :]                                        # (L*Mp, tn)
    lta2 = lta * lta
    tn = lta.shape[-1]
    var_ref[...] = (variance - sum_a2) + jnp.sum(
        lta2.reshape(num_latent, mp, tn), axis=1)                     # dense (L, tn) store


# --------------------------------------------------------------------------
# Forward pass (whiten_flag=True, marginals_only=True, latent_dim_last=True)
# --------------------------------------------------------------------------
def svgp_forward(x_data, z_locations, q_mu, q_sqrt,
                 variance=KERNEL_VARIANCE, lengthscale=KERNEL_LENGTHSCALE):
    N, D = x_data.shape
    M = z_locations.shape[0]
    L = q_mu.shape[0]
    Mp = _round_up(M, 8)
    Lp = _round_up(L, 8)
    variance = float(variance)
    lengthscale = float(lengthscale)

    # ---- tiny O(M^2 / M^3) glue in plain JAX (not the hot path) ----
    zsq = jnp.sum(z_locations * z_locations, axis=-1, keepdims=True)              # (M, 1)
    sq_zz = jnp.maximum(zsq + zsq.T - 2.0 * (z_locations @ z_locations.T), 0.0)
    cov_zz = variance * jnp.exp(-0.5 * sq_zz / (lengthscale * lengthscale))
    # TODO(synk): Cholesky + triangular inverse have no clean Pallas TPU equivalent;
    # kept in plain JAX on the tiny (M, M) matrix.
    chol_zz = jnp.linalg.cholesky(cov_zz + JITTER * jnp.eye(M, dtype=cov_zz.dtype))
    linv = jax.scipy.linalg.solve_triangular(
        chol_zz, jnp.eye(M, dtype=chol_zz.dtype), lower=True)                     # (M, M)

    # Fold Linv and `variance` into the resident operands -> one stacked LHS.
    qmu_l = variance * (q_mu @ linv)                                              # (L, M)
    qsqrt_t = jnp.transpose(q_sqrt, (0, 2, 1)).reshape(L * M, M)
    qsqrt_l = (variance * (qsqrt_t @ linv)).reshape(L, M, M)                      # (L, M, M)
    g = (variance * variance) * (linv.T @ linv)                                   # (M, M)

    # Zero-pad M / L to sublane multiples; padding is exact zeros through the fold.
    qmu_l_p = jnp.pad(qmu_l, ((0, Lp - L), (0, Mp - M)))
    g_p = jnp.pad(g, ((0, Mp - M), (0, Mp - M)))
    qsqrt_l_p = jnp.pad(qsqrt_l, ((0, 0), (0, Mp - M), (0, Mp - M))).reshape(L * Mp, Mp)
    stacked_lhs = jnp.concatenate([qmu_l_p, g_p, qsqrt_l_p], axis=0)              # (R, Mp)
    r_rows = Lp + Mp + L * Mp

    # z pre-scaled by 1/lengthscale; padded rows get a huge squared norm so their Kzx
    # entries underflow to exactly 0.
    z_s = jnp.pad(z_locations / lengthscale, ((0, Mp - M), (0, 0)))               # (Mp, D)
    zsq_s = jnp.pad(zsq / (lengthscale * lengthscale), ((0, Mp - M), (0, 0)),
                    constant_values=_BIG_SQDIST)                                  # (Mp, 1)

    # ---- N tiling: lane-dense outputs; per-generation tn / VMEM tuning ----
    vmem_limit, tn_cap, split_two_cores = _device_tuning()
    n128 = _round_up(N, 128)
    tn = min(tn_cap, n128)
    if split_two_cores and n128 >= 256:
        tn = min(tn, max(128, _round_up((N + 1) // 2, 128)))   # >= 2 tiles for 2 TCs
    # Guard the (R, tn) stacked intermediate against vreg/VMEM blowup for large L*M.
    interm_cap = max(128, ((6 * 1024 * 1024) // (4 * r_rows)) // 128 * 128)
    tn = min(tn, interm_cap)

    n_pad = _round_up(N, tn)
    x_t = jnp.pad(x_data.T, ((0, 0), (0, n_pad - N)))                             # (D, n_pad)

    kern = functools.partial(
        _svgp_fused_kernel,
        variance=variance, inv_lengthscale=1.0 / lengthscale,
        num_latent=L, lp=Lp, mp=Mp)

    f_mean, f_var = pl.pallas_call(
        kern,
        out_shape=(jax.ShapeDtypeStruct((L, n_pad), jnp.float32),
                   jax.ShapeDtypeStruct((L, n_pad), jnp.float32)),
        grid_spec=pltpu.PrefetchScalarGridSpec(
            num_scalar_prefetch=0,
            grid=(n_pad // tn,),
            in_specs=[
                pl.BlockSpec((D, tn), lambda i: (0, i)),        # x^T tile (streams, lane-dense)
                pl.BlockSpec((Mp, D), lambda i: (0, 0)),        # z / lengthscale (resident)
                pl.BlockSpec((Mp, 1), lambda i: (0, 0)),        # |z/l|^2 (resident)
                pl.BlockSpec((r_rows, Mp), lambda i: (0, 0)),   # stacked folded LHS (resident)
            ],
            out_specs=(
                pl.BlockSpec((L, tn), lambda i: (0, i)),        # mean (lane-dense)
                pl.BlockSpec((L, tn), lambda i: (0, i)),        # var  (lane-dense)
            )),
        compiler_params=pltpu.CompilerParams(
            dimension_semantics=("parallel",),
            vmem_limit_bytes=vmem_limit),
    )(x_t, z_s, zsq_s, stacked_lhs)

    # latent_dim_last=True; drop any N padding.
    return f_mean[:, :N].T, f_var[:, :N].T


def whitened_kl_sum(q_mu, q_sqrt):
    """KL(N(q_mu, L L^T) || N(0, I)) summed over latent processes.
    Corresponds to the __summed_over_batch_kl side-effect of forward()."""
    M = q_mu.shape[1]
    diag = jnp.diagonal(q_sqrt, axis1=-2, axis2=-1)
    logdet = 2.0 * jnp.sum(jnp.log(jnp.abs(diag)), axis=-1)
    trace = jnp.sum(q_sqrt * q_sqrt, axis=(-2, -1))
    mahal = jnp.sum(q_mu * q_mu, axis=-1)
    return jnp.sum(0.5 * (trace + mahal - M - logdet))


# --------------------------------------------------------------------------
# Pure-JAX reference (for correctness check)
# --------------------------------------------------------------------------
def _reference_forward(x, z, q_mu, q_sqrt):
    def k(a, b):
        sq = (jnp.sum(a * a, -1)[:, None] + jnp.sum(b * b, -1)[None, :]
              - 2.0 * a @ b.T)
        return KERNEL_VARIANCE * jnp.exp(-0.5 * jnp.maximum(sq, 0.0)
                                         / (KERNEL_LENGTHSCALE ** 2))
    Kxx, Kzx, Kzz = k(x, x), k(z, x), k(z, z)
    Lz = jnp.linalg.cholesky(Kzz + JITTER * jnp.eye(z.shape[0], dtype=jnp.float32))
    A = jax.scipy.linalg.solve_triangular(Lz, Kzx, lower=True)
    mean = q_mu @ A
    base = jnp.diag(Kxx) - jnp.sum(A * A, 0)
    lta = jnp.einsum('lkm,kn->lmn', q_sqrt, A)
    var = base[None, :] + jnp.sum(lta * lta, 1)
    return mean.T, var.T


if __name__ == "__main__":
    N, D, M, L = 16, 4, 8, 2   # data points, data_dim, inducing points, latent processes

    key = jax.random.PRNGKey(0)
    k1, k2, k3, k4 = jax.random.split(key, 4)

    with jax.default_matmul_precision("float32"):
        x_data = jax.random.normal(k1, (N, D), dtype=jnp.float32)
        # Deterministic parameter init mirroring reset_params():
        z_locations = jax.random.normal(k2, (M, D), dtype=jnp.float32)   # nn.init.normal_
        q_mu = jax.random.normal(k3, (L, M), dtype=jnp.float32)          # nn.init.normal_
        q_sqrt = jnp.tile(jnp.eye(M, dtype=jnp.float32)[None], (L, 1, 1))  # stacked identity

        f_mean, f_var = svgp_forward(x_data, z_locations, q_mu, q_sqrt)
        kl = whitened_kl_sum(q_mu, q_sqrt)   # side-channel value (accumulated KL)
        jax.block_until_ready((f_mean, f_var, kl))
        assert f_mean.shape == (N, L) and f_var.shape == (N, L)

        ref_mean, ref_var = _reference_forward(x_data, z_locations, q_mu, q_sqrt)
        assert jnp.allclose(f_mean, ref_mean, atol=2e-4, rtol=2e-4)
        assert jnp.allclose(f_var, ref_var, atol=2e-4, rtol=2e-4)

        # Non-identity lower-triangular q_sqrt exercises the batched L^T A path.
        q_sqrt_tri = q_sqrt + jnp.tril(
            0.1 * jax.random.normal(k4, (L, M, M), dtype=jnp.float32), -1)
        f_mean2, f_var2 = svgp_forward(x_data, z_locations, q_mu, q_sqrt_tri)
        ref_mean2, ref_var2 = _reference_forward(x_data, z_locations, q_mu, q_sqrt_tri)
        jax.block_until_ready((f_mean2, f_var2))
        assert jnp.allclose(f_mean2, ref_mean2, atol=2e-4, rtol=2e-4)
        assert jnp.allclose(f_var2, ref_var2, atol=2e-4, rtol=2e-4)

    print("KERNEL_OK")
</pallas_src>

<mosaic_0001>
module attributes {stable_mosaic.version = 11 : i64} {
  func.func @_svgp_fused_kernel(%arg0: i32, %arg1: memref<4x128xf32, #tpu.memory_space<vmem>>, %arg2: memref<8x4xf32, #tpu.memory_space<vmem>>, %arg3: memref<8x1xf32, #tpu.memory_space<vmem>>, %arg4: memref<32x8xf32, #tpu.memory_space<vmem>>, %arg5: memref<2x128xf32, #tpu.memory_space<vmem>>, %arg6: memref<2x128xf32, #tpu.memory_space<vmem>>) attributes {dimension_semantics = [#tpu.dimension_semantics<parallel>], iteration_bounds = array<i64: 1>, scalar_prefetch = 0 : i64, scratch_operands = 0 : i64, tpu.core_type = #tpu.core_type<tc>, window_params = [{transform_indices = @transform_0, window_bounds = array<i64: 4, 128>}, {pipeline_mode = #tpu.pipeline_mode<synchronous>, transform_indices = @transform_1, window_bounds = array<i64: 8, 4>}, {pipeline_mode = #tpu.pipeline_mode<synchronous>, transform_indices = @transform_2, window_bounds = array<i64: 8, 1>}, {pipeline_mode = #tpu.pipeline_mode<synchronous>, transform_indices = @transform_3, window_bounds = array<i64: 32, 8>}, {transform_indices = @transform_4, window_bounds = array<i64: 2, 128>}, {transform_indices = @transform_5, window_bounds = array<i64: 2, 128>}]} {
    %c0 = arith.constant 0 : index
    %c0_0 = arith.constant 0 : index
    %0 = vector.load %arg1[%c0, %c0_0] : memref<4x128xf32, #tpu.memory_space<vmem>>, vector<4x128xf32>
    %cst = arith.constant 0.666666686 : f32
    %1 = vector.broadcast %cst : f32 to vector<4x128xf32>
    %2 = arith.mulf %0, %1 : vector<4x128xf32>
    %3 = arith.mulf %2, %2 : vector<4x128xf32>
    %cst_1 = arith.constant dense<0.000000e+00> : vector<128xf32>
    %4 = vector.multi_reduction <add>, %3, %cst_1 [0] : vector<4x128xf32> to vector<128xf32>
    %5 = vector.shape_cast %4 : vector<128xf32> to vector<1x128xf32>
    %c0_2 = arith.constant 0 : index
    %c0_3 = arith.constant 0 : index
    %6 = vector.load %arg2[%c0_2, %c0_3] : memref<8x4xf32, #tpu.memory_space<vmem>>, vector<8x4xf32>
    %cst_4 = arith.constant dense<0.000000e+00> : vector<8x128xf32>
    %7 = tpu.matmul %6, %2, %cst_4 {dimension_numbers = #tpu.dot_dimension_numbers<[1], [0], [0], [1], [0, 0, 1, 1], [], []>, precision = #tpu.contract_precision<fp32>} : vector<8x4xf32>, vector<4x128xf32>, vector<8x128xf32> -> vector<8x128xf32>
    %c0_5 = arith.constant 0 : index
    %c0_6 = arith.constant 0 : index
    %8 = vector.load %arg3[%c0_5, %c0_6] : memref<8x1xf32, #tpu.memory_space<vmem>>, vector<8x1xf32>
    %9 = vector.broadcast %8 : vector<8x1xf32> to vector<8x128xf32>
    %10 = vector.broadcast %5 : vector<1x128xf32> to vector<8x128xf32>
    %11 = arith.addf %9, %10 : vector<8x128xf32>
    %cst_7 = arith.constant 2.000000e+00 : f32
    %12 = vector.broadcast %cst_7 : f32 to vector<8x128xf32>
    %13 = arith.mulf %12, %7 : vector<8x128xf32>
    %14 = arith.subf %11, %13 : vector<8x128xf32>
    %cst_8 = arith.constant 0.000000e+00 : f32
    %15 = vector.broadcast %cst_8 : f32 to vector<8x128xf32>
    %16 = arith.maximumf %14, %15 : vector<8x128xf32>
    %cst_9 = arith.constant -5.000000e-01 : f32
    %17 = vector.broadcast %cst_9 : f32 to vector<8x128xf32>
    %18 = arith.mulf %17, %16 : vector<8x128xf32>
    %19 = math.exp %18 : vector<8x128xf32>
    %c0_10 = arith.constant 0 : index
    %c0_11 = arith.constant 0 : index
    %20 = vector.load %arg4[%c0_10, %c0_11] : memref<32x8xf32, #tpu.memory_space<vmem>>, vector<32x8xf32>
    %cst_12 = arith.constant dense<0.000000e+00> : vector<32x128xf32>
    %21 = tpu.matmul %20, %19, %cst_12 {dimension_numbers = #tpu.dot_dimension_numbers<[1], [0], [0], [1], [0, 0, 1, 1], [], []>, precision = #tpu.contract_precision<fp32>} : vector<32x8xf32>, vector<8x128xf32>, vector<32x128xf32> -> vector<32x128xf32>
    %22 = vector.extract_strided_slice %21 {offsets = [0, 0], sizes = [2, 128], strides = [1, 1]} : vector<32x128xf32> to vector<2x128xf32>
    %c0_13 = arith.constant 0 : index
    %c0_14 = arith.constant 0 : index
    %23 = vector.load %arg5[%c0_13, %c0_14] : memref<2x128xf32, #tpu.memory_space<vmem>>, vector<2x128xf32>
    tpu.vector_store %arg5[%c0_13, %c0_14], %22 {strides = array<i32>} : memref<2x128xf32, #tpu.memory_space<vmem>>, vector<2x128xf32>,
    %24 = vector.extract_strided_slice %21 {offsets = [8, 0], sizes = [8, 128], strides = [1, 1]} : vector<32x128xf32> to vector<8x128xf32>
    %25 = arith.mulf %19, %24 : vector<8x128xf32>
    %cst_15 = arith.constant dense<0.000000e+00> : vector<128xf32>
    %26 = vector.multi_reduction <add>, %25, %cst_15 [0] : vector<8x128xf32> to vector<128xf32>
    %27 = vector.shape_cast %26 : vector<128xf32> to vector<1x128xf32>
    %28 = vector.extract_strided_slice %21 {offsets = [16, 0], sizes = [16, 128], strides = [1, 1]} : vector<32x128xf32> to vector<16x128xf32>
    %29 = arith.mulf %28, %28 : vector<16x128xf32>
    %cst_16 = arith.constant 1.000000e+00 : f32
    %30 = vector.broadcast %cst_16 : f32 to vector<1x128xf32>
    %31 = arith.subf %30, %27 : vector<1x128xf32>
    %32 = vector.shape_cast %29 : vector<16x128xf32> to vector<2x8x128xf32>
    %cst_17 = arith.constant dense<0.000000e+00> : vector<2x128xf32>
    %33 = vector.multi_reduction <add>, %32, %cst_17 [1] : vector<2x8x128xf32> to vector<2x128xf32>
    %34 = vector.broadcast %31 : vector<1x128xf32> to vector<2x128xf32>
    %35 = arith.addf %34, %33 : vector<2x128xf32>
    %c0_18 = arith.constant 0 : index
    %c0_19 = arith.constant 0 : index
    %36 = vector.load %arg6[%c0_18, %c0_19] : memref<2x128xf32, #tpu.memory_space<vmem>>, vector<2x128xf32>
    tpu.vector_store %arg6[%c0_18, %c0_19], %35 {strides = array<i32>} : memref<2x128xf32, #tpu.memory_space<vmem>>, vector<2x128xf32>,
    return
  }
  func.func @transform_0(%arg0: i32) -> (i32, i32) {
    %c0_i32 = arith.constant 0 : i32
    %c0_i32_0 = arith.constant 0 : i32
    return %c0_i32, %arg0 : i32, i32
  }
  func.func @transform_1(%arg0: i32) -> (i32, i32) {
    %c0_i32 = arith.constant 0 : i32
    %c0_i32_0 = arith.constant 0 : i32
    %c0_i32_1 = arith.constant 0 : i32
    return %c0_i32, %c0_i32_0 : i32, i32
  }
  func.func @transform_2(%arg0: i32) -> (i32, i32) {
    %c0_i32 = arith.constant 0 : i32
    %c0_i32_0 = arith.constant 0 : i32
    %c0_i32_1 = arith.constant 0 : i32
    return %c0_i32, %c0_i32_0 : i32, i32
  }
  func.func @transform_3(%arg0: i32) -> (i32, i32) {
    %c0_i32 = arith.constant 0 : i32
    %c0_i32_0 = arith.constant 0 : i32
    %c0_i32_1 = arith.constant 0 : i32
    return %c0_i32, %c0_i32_0 : i32, i32
  }
  func.func @transform_4(%arg0: i32) -> (i32, i32) {
    %c0_i32 = arith.constant 0 : i32
    %c0_i32_0 = arith.constant 0 : i32
    return %c0_i32, %arg0 : i32, i32
  }
  func.func @transform_5(%arg0: i32) -> (i32, i32) {
    %c0_i32 = arith.constant 0 : i32
    %c0_i32_0 = arith.constant 0 : i32
    return %c0_i32, %arg0 : i32, i32
  }
}

</mosaic_0001>

<bundles_post_ra>
// kernel: tpu_custom_call.1
= control target key start
LH: loop header
LB: loop body
LE: loop exit
PB: predicated region body
PF: predicated region fallthrough
CT: control target
= control target key end

     0   :  { %11 = vsyncpa [#allocation3], 0  ;;  %vm24_vm0 = vcmask 1043456   ;;  %v1321_v2 = vmov 0.0   ;;  %vm1322_vm1 = vmmov 0   ;;  %vm33_vm2 = vcmask 31744   ;;  %s1415_s0 = inlined_call_operand.vmem [shape: f32[4,128], index: 0, kind: input, shape index: {}]   ;;  %s1416_s1 = inlined_call_operand.vmem [shape: f32[8,4], index: 1, kind: input, shape index: {}]   ;;  %s1417_s2 = inlined_call_operand.vmem [shape: f32[8,1], index: 2, kind: input, shape index: {}]   ;;  %s1418_s3 = inlined_call_operand.vmem [shape: f32[32,8], index: 3, kind: input, shape index: {}]   ;;  %s1419_s4 = inlined_call_operand.hbm [shape: f32[2,128], index: 4, kind: output, shape index: {0}]   ;;  %s1420_s5 = inlined_call_operand.hbm [shape: f32[2,128], index: 5, kind: output, shape index: {1}]  }
   0x1   :  { %v21_v0 = vld [vmem:[%s1415_s0] sm:$0xf]  ;;  %1191 = vmatprep.subr.mxu0 %v1321_v2  ;;  %1193 = vmatprep.mubr.msk.f32.mxu0 %vm1322_vm1, %v1321_v2 }
   0x2   :  { %v32_v1 = vld [vmem:[%s1416_s1] sm:$0xff]  ;;  %v22_v3 = vmul.f32 0.6666667, %v21_v0  ;;  %1196 = vmatprep.subr.mxu1 %v1321_v2  ;;  %1198 = vmatprep.mubr.msk.f32.mxu1 %vm1322_vm1, %v1321_v2 }
   0x3   :  { %v486_v4 = vld [vmem:[%s1417_s2] sm:$0xff]  ;;  %v35_v5 = vsel %vm33_vm2, %v32_v1, 0 }
   0x4   :  { %12 = vsyncpa [#allocation5], 0  ;;  %v38_v6 = vsel %vm24_vm0, %v22_v3, 0  ;;  %v106_v7 = vand.u32 4294901760, %v35_v5  ;;  %v1323_v8 = vmov 0   ;;  %v499_v18 = vld [vmem:[%s1418_s3] sm:$0xff]  ;;  %v23_v25 = vmul.f32 %v22_v3, %v22_v3 }
   0x5   :  { %1274 = vset.pattern.permute.xlu0 %v1323_v8  ;;  %v71_v9 = vand.u32 4294901760, %v38_v6  ;;  %vm503_vm3 = vcmask 64512   ;;  %v500_v54 = vld [vmem:[%s1418_s3 + $0x8] sm:$0xff]  ;;  %v501_v55 = vld [vmem:[%s1418_s3 + $0x10] sm:$0xff]  ;;  %v502_v60 = vld [vmem:[%s1418_s3 + $0x18] sm:$0xff]  ;;  %s1324_s3 = smov [#allocation2]  }
   0x6   :  { %489 = vperm.xlu0 %1274, %v486_v4   ;;  %v107_v10 = vsub.f32 %v35_v5, %v106_v7  ;;  %v505_v19 = vsel %vm503_vm3, %v499_v18, 0  ;;  %v25_v26 = vsel %vm24_vm0, %v23_v25, 0.0  ;;  %v508_v57 = vsel %vm503_vm3, %v500_v54, 0  ;;  %s1127_s29 = sshll.u32 %s1324_s3, 4  ;;  %s1128_s29 = int_to_ptr.vmem [resolvable:$true] %s1127_s29 }
   0x7   :  { %1192 = vmatpush3.msra.mxu0 %v71_v9  ;;  %v148_v11 = vsub.f32 %v38_v6, %v71_v9  ;;  %v1376_v20 = vand.u32 4294901760, %v505_v19  ;;  %v26_v27 = vrot.slane %v25_v26, 4  ;;  %v511_v59 = vsel %vm503_vm3, %v501_v55, 0  ;;  %s1277_s30 = scalar_lea.vmem %s1128_s29, 32  ;;  %p1282_p1 = scmp.lt.s32.totalorder %s1128_s29, %s1128_s29 }
   0x8   :  { %v108_v12 = vand.u32 4294901760, %v107_v10  ;;  %1201 = vmatprep.subr.mxu0 %v1321_v2  ;;  %v592_v62 = vand.u32 4294901760, %v508_v57  ;;  %v602_v63 = vand.u32 4294901760, %v511_v59  ;;  %v514_v0 = vsel %vm503_vm3, %v502_v60, 0  ;;  %p1278_p0 = scmp.ne.s32.totalorder %s1128_s29, %s1277_s30  ;;  %p1283_p2 = scmp.lt.s32.totalorder %s1277_s30, %s1277_s30 }
   0x9   :  { %v149_v13 = vand.u32 4294901760, %v148_v11  ;;  %v1379_v21 = vsub.f32 %v505_v19, %v1376_v20  ;;  %v27_v28 = vadd.f32 %v26_v27, %v25_v26 }
   0xa   :  { %v109_v14 = vsub.f32 %v107_v10, %v108_v12  ;;  %v593_v1 = vsub.f32 %v508_v57, %v592_v62  ;;  %v603_v3 = vsub.f32 %v511_v59, %v602_v63  ;;  %p1284_p3 = por %p1283_p2, %p1282_p1 }
   0xb   :  { %v150_v15 = vsub.f32 %v148_v11, %v149_v13  ;;  %v584_v22 = vand.u32 4294901760, %v1379_v21  ;;  %v28_v29 = vrot.slane %v27_v28, 2 }
   0xc   :  { %v110_v16 = vand.u32 4294901760, %v109_v14  ;;  %v594_v4 = vand.u32 4294901760, %v593_v1  ;;  %v604_v6 = vand.u32 4294901760, %v603_v3  ;;  %p1285_p4 = pnand %p1284_p3, %p1278_p0 }
   0xd   :  { %v151_v17 = vand.u32 4294901760, %v150_v15  ;;  %v585_v23 = vsub.f32 %v1379_v21, %v584_v22  ;;  %v29_v30 = vadd.f32 %v28_v29, %v27_v28 }
   0xe   :  { %1194 = vmatmul.mubr.f32.vlgmr.msra.gmra.mxu0 %v110_v16 }
   0xf   :  { %1197 = vmatpush3.msra.mxu1 %v151_v17  ;;  %1202 = vmatpush3.msra.mxu0 %v148_v11  ;;  %v586_v24 = vand.u32 4294901760, %v585_v23  ;;  %v30_v35 = vrot.slane %v29_v30, 1 }
  0x10   :  { %1199 = vmatmul.mubr.f32.vlgmr.msra.gmra.mxu1 %v106_v7  ;;  %1203 = vmatprep.mubr.msk.f32.mxu0 %vm1322_vm1, %v1321_v2 }
  0x11   :  { %1206 = vmatprep.subr.mxu1 %v1321_v2  ;;  %1208 = vmatprep.mubr.msk.f32.mxu1 %vm1322_vm1, %v1321_v2  ;;  %v31_v43 = vadd.f32 %v30_v35, %v29_v30 }
  0x12   :  { %1204 = vmatmul.mubr.f32.vlgmr.msra.gmra.mxu0 %v107_v10  ;;  %1207 = vmatpush3.msra.mxu1 %v71_v9 }
  0x13   :  { %1211 = vmatprep.subr.mxu0 %v1321_v2  ;;  %1213 = vmatprep.mubr.msk.f32.mxu0 %vm1322_vm1, %v1321_v2 }
  0x14   :  { %1209 = vmatmul.mubr.f32.vlgmr.msra.gmra.mxu1 %v108_v12  ;;  %1212 = vmatpush3.msra.mxu0 %v149_v13 }
  0x15   :  { %1216 = vmatprep.subr.mxu1 %v1321_v2  ;;  %1218 = vmatprep.mubr.msk.f32.mxu1 %vm1322_vm1, %v1321_v2  ;;  %v612_v2 = vand.u32 4294901760, %v514_v0 }
  0x16   :  { %1214 = vmatmul.mubr.f32.vlgmr.msra.gmra.mxu0 %v106_v7  ;;  %1217 = vmatpush3.msra.mxu1 %v71_v9  ;;  %v605_v9 = vsub.f32 %v603_v3, %v604_v6 }
  0x17   :  { %1223 = vmatprep.mubr.f32.mxu0 %v586_v24  ;;  %v613_v5 = vsub.f32 %v514_v0, %v612_v2 }
  0x18   :  { %1219 = vmatmul.mubr.f32.vlgmr.msra.gmra.mxu1 %v106_v7  ;;  %v595_v7 = vsub.f32 %v593_v1, %v594_v4  ;;  %v606_v14 = vand.u32 4294901760, %v605_v9 }
  0x19   :  { %1231 = vmatprep.mubr.f32.mxu1 %v1376_v20  ;;  %v614_v8 = vand.u32 4294901760, %v613_v5 }
  0x1a   :  { %v596_v12 = vand.u32 4294901760, %v595_v7 }
  0x1b   :  { %v615_v13 = vsub.f32 %v613_v5, %v614_v8 }
  0x1d   :  { %v616_v17 = vand.u32 4294901760, %v615_v13 }
  0x81   :  { %v490_v42 = vpop.permute.xlu0 %489 }
  0x82   :  { %v492_v50 = vadd.f32 %v490_v42, %v31_v43 }
  0xce   :  { %v112_v31 = vpop.f32.mrf.mxu0 }
  0xd0   :  { %v1195_v32 = vpop.f32.mrf.mxu0  ;;  %v188_v33 = vpop.f32.mrf.mxu1 }
  0xd1   :  { %v189_v34 = vadd.f32 %v188_v33, %v112_v31 }
  0xd2   :  { %v262_v36 = vpop.f32.mrf.mxu0  ;;  %v1200_v37 = vpop.f32.mrf.mxu1 }
  0xd3   :  { %v263_v38 = vadd.f32 %v262_v36, %v189_v34 }
  0xd4   :  { %v1205_v39 = vpop.f32.mrf.mxu0  ;;  %v336_v40 = vpop.f32.mrf.mxu1 }
  0xd5   :  { %v337_v41 = vadd.f32 %v336_v40, %v263_v38 }
  0xd6   :  { %v410_v44 = vpop.f32.mrf.mxu0  ;;  %v1210_v45 = vpop.f32.mrf.mxu1 }
  0xd7   :  { %v411_v46 = vadd.f32 %v410_v44, %v337_v41 }
  0xd8   :  { %v1215_v47 = vpop.f32.mrf.mxu0  ;;  %v482_v48 = vpop.f32.mrf.mxu1 }
  0xd9   :  { %v483_v49 = vadd.f32 %v482_v48, %v411_v46 }
  0xda   :  { %v1220_v51 = vpop.f32.mrf.mxu1 }
  0xdb   :  { %v493_v52 = vmul.f32 2.0, %v483_v49 }
  0xdd   :  { %v494_v53 = vsub.f32 %v492_v50, %v493_v52 }
  0xdf   :  { %v495_v56 = vmax.f32 %v494_v53, 0.0 }
  0xe1   :  { %v496_v58 = vmul.f32 -0.5, %v495_v56 }
  0xe3   :  { %v497_v61 = vmul.f32 1.442695, %v496_v58 }
  0xe5   :  { %1275 = vpow2.f32 %v497_v61 }
  0xf2   :  { %v1399_v10 = vpop.eup %1275 }
  0xf3   :  { %v547_v11 = vand.u32 4294901760, %v1399_v10 }
  0xf5   :  { %1221 = vmatprep.subr.mxu0 %v547_v11  ;;  %v654_v15 = vsub.f32 %v1399_v10, %v547_v11 }
  0xf6   :  { %1222 = vmatpush3.msra.mxu0 %v547_v11 }
  0xf7   :  { %1224 = vmatmul.mubr.f32.vlgmr.msra.gmra.mxu0 %v596_v12  ;;  %1237 = vmatprep.subr.mxu0 %v654_v15  ;;  %v655_v16 = vand.u32 4294901760, %v654_v15 }
  0xf8   :  { %1238 = vmatpush3.msra.mxu0 %v654_v15  ;;  %1226 = vmatprep.mubr.f32.mxu0 %v606_v14 }
  0xf9   :  { %1253 = vmatprep.subr.mxu0 %v655_v16  ;;  %v656_v18 = vsub.f32 %v654_v15, %v655_v16 }
  0xfb   :  { %1227 = vmatmul.mubr.f32.gmra.mxu0 %v616_v17  ;;  %v657_v19 = vand.u32 4294901760, %v656_v18 }
  0xfc   :  { %1239 = vmatprep.mubr.f32.mxu0 %v1379_v21 }
  0xfd   :  { %1229 = vmatprep.subr.mxu1 %v657_v19 }
  0xfe   :  { %1230 = vmatpush3.msra.mxu1 %v657_v19 }
  0xff   :  { %1232 = vmatmul.mubr.f32.vlgmr.msra.gmra.mxu1 %v592_v62  ;;  %1240 = vmatmul.mubr.f32.vlgmr.msra.gmra.mxu0 %v593_v1 }
 0x100   :  { %1245 = vmatprep.subr.mxu1 %v547_v11  ;;  %1254 = vmatpush3.msra.mxu0 %v655_v16 }
 0x101   :  { %1246 = vmatpush3.msra.mxu1 %v547_v11  ;;  %1234 = vmatprep.mubr.f32.mxu1 %v602_v63 }
 0x102   :  { %1261 = vmatprep.subr.mxu1 %v547_v11  ;;  %1242 = vmatprep.mubr.f32.mxu0 %v603_v3 }
 0x103   :  { %1235 = vmatmul.mubr.f32.gmra.mxu1 %v612_v2  ;;  %1243 = vmatmul.mubr.f32.gmra.mxu0 %v613_v5 }
 0x104   :  { %1247 = vmatprep.mubr.f32.mxu1 %v584_v22  ;;  %1255 = vmatprep.mubr.f32.mxu0 %v1376_v20 }
 0x107   :  { %1248 = vmatmul.mubr.f32.vlgmr.msra.gmra.mxu1 %v594_v4  ;;  %1256 = vmatmul.mubr.f32.vlgmr.msra.gmra.mxu0 %v592_v62 }
 0x108   :  { %1262 = vmatpush3.msra.mxu1 %v547_v11  ;;  %1250 = vmatprep.mubr.f32.mxu1 %v604_v6 }
 0x109   :  { %1258 = vmatprep.mubr.f32.mxu0 %v602_v63 }
 0x10b   :  { %1251 = vmatmul.mubr.f32.gmra.mxu1 %v614_v8  ;;  %1259 = vmatmul.mubr.f32.gmra.mxu0 %v612_v2 }
 0x10c   :  { %1263 = vmatprep.mubr.f32.mxu1 %v1376_v20 }
 0x10f   :  { %1264 = vmatmul.mubr.f32.vlgmr.msra.gmra.mxu1 %v592_v62 }
 0x110   :  { %1266 = vmatprep.mubr.f32.mxu1 %v602_v63 }
 0x113   :  { %1267 = vmatmul.mubr.f32.gmra.mxu1 %v612_v2 }
 0x1b7   :  { %v1225_v23 = vpop.f32.mrf.mxu0 }
 0x1b9   :  { %v588_v24 = vpop.f32.mrf.mxu0 }
 0x1bb   :  { %v1228_v25 = vpop.f32.mrf.mxu0 }
 0x1bd   :  { %v608_v26 = vpop.f32.mrf.mxu0 }
 0x1bf   :  { %v1233_v21 = vpop.f32.mrf.mxu1  ;;  %v1241_v22 = vpop.f32.mrf.mxu0 }
 0x1c0   :  { %v701_v31 = vadd.f32 %v1233_v21, %v1225_v23 }
 0x1c1   :  { %v694_v27 = vpop.f32.mrf.mxu1  ;;  %v786_v28 = vpop.f32.mrf.mxu0 }
 0x1c2   :  { %v695_v34 = vadd.f32 %v694_v27, %v588_v24  ;;  %v794_v20 = vadd.f32 %v1241_v22, %v701_v31 }
 0x1c3   :  { %v1236_v29 = vpop.f32.mrf.mxu1  ;;  %v1244_v30 = vpop.f32.mrf.mxu0 }
 0x1c4   :  { %v713_v37 = vadd.f32 %v1236_v29, %v1228_v25  ;;  %v787_v40 = vadd.f32 %v786_v28, %v695_v34 }
 0x1c5   :  { %v706_v32 = vpop.f32.mrf.mxu1  ;;  %v800_v33 = vpop.f32.mrf.mxu0 }
 0x1c6   :  { %v707_v41 = vadd.f32 %v706_v32, %v608_v26  ;;  %v808_v44 = vadd.f32 %v1244_v30, %v713_v37 }
 0x1c7   :  { %v1249_v35 = vpop.f32.mrf.mxu1  ;;  %v1257_v36 = vpop.f32.mrf.mxu0 }
 0x1c8   :  { %v890_v42 = vadd.f32 %v1249_v35, %v794_v20  ;;  %v801_v48 = vadd.f32 %v800_v33, %v707_v41 }
 0x1c9   :  { %v881_v38 = vpop.f32.mrf.mxu1  ;;  %v979_v39 = vpop.f32.mrf.mxu0 }
 0x1ca   :  { %v882_v45 = vadd.f32 %v881_v38, %v787_v40  ;;  %v986_v49 = vadd.f32 %v1257_v36, %v890_v42 }
 0x1cb   :  { %v1252_v43 = vpop.f32.mrf.mxu1  ;;  %v1260_v47 = vpop.f32.mrf.mxu0 }
 0x1cc   :  { %v906_v50 = vadd.f32 %v1252_v43, %v808_v44  ;;  %v980_v52 = vadd.f32 %v979_v39, %v882_v45 }
 0x1cd   :  { %v897_v46 = vpop.f32.mrf.mxu1  ;;  %v991_v55 = vpop.f32.mrf.mxu0 }
 0x1ce   :  { %v898_v53 = vadd.f32 %v897_v46, %v801_v48  ;;  %v998_v57 = vadd.f32 %v1260_v47, %v906_v50 }
 0x1cf   :  { %v1265_v51 = vpop.f32.mrf.mxu1 }
 0x1d0   :  { %v1076_v54 = vadd.f32 %v1265_v51, %v986_v49  ;;  %v992_v61 = vadd.f32 %v991_v55, %v898_v53 }
 0x1d1   :  { %v1069_v56 = vpop.f32.mrf.mxu1 }
 0x1d2   :  { %v1092_v58 = vmul.f32 %v1399_v10, %v1076_v54  ;;  %v1070_v59 = vadd.f32 %v1069_v56, %v980_v52 }
 0x1d3   :  { %v1268_v60 = vpop.f32.mrf.mxu1 }
 0x1d4   :  { %v1093_v62 = vrot.slane %v1092_v58, 4  ;;  %1091 = vst [vmem:[#allocation2] sm:$0x3] %v1070_v59  ;;  %v1088_v63 = vadd.f32 %v1268_v60, %v998_v57 }
 0x1d5   :  { %v1081_v0 = vpop.f32.mrf.mxu1 }
 0x1d6   :  { %1288 = shalt.err (!%p1285_p4)
}
 0x1d7   :  { %1130 = dma.vmem_to_hbm [thread:$0]  %s1128_s29, 32, %s1419_s4, [#allocation3]   ;;  %v1094_v1 = vadd.f32 %v1093_v62, %v1092_v58  ;;  %v1100_v2 = vmul.f32 %v1088_v63, %v1088_v63  ;;  %v1082_v3 = vadd.f32 %v1081_v0, %v992_v61  ;;  %vm1116_vm4 = vcmask 1041409  }
 0x1d8   :  { %s1325_s4 = smov [#allocation4]  }
 0x1d9   :  { %v1095_v4 = vrot.slane %v1094_v1, 2  ;;  %v1108_v5 = vrot.slane %v1100_v2, 4  ;;  %v1099_v6 = vmul.f32 %v1082_v3, %v1082_v3  ;;  %s1137_s8 = sshll.u32 %s1325_s4, 4  ;;  %s1138_s8 = int_to_ptr.vmem [resolvable:$true] %s1137_s8 }
 0x1da   :  { %s1297_s9 = scalar_lea.vmem %s1138_s8, 32  ;;  %p1302_p6 = scmp.lt.s32.totalorder %s1138_s8, %s1138_s8 }
 0x1db   :  { %v1096_v7 = vadd.f32 %v1095_v4, %v1094_v1  ;;  %v1109_v8 = vadd.f32 %v1108_v5, %v1100_v2  ;;  %v1102_v9 = vrot.slane %v1099_v6, 4  ;;  %p1298_p5 = scmp.ne.s32.totalorder %s1138_s8, %s1297_s9  ;;  %p1303_p7 = scmp.lt.s32.totalorder %s1297_s9, %s1297_s9 }
 0x1dd   :  { %v1110_v10 = vrot.slane %v1109_v8, 2  ;;  %v1103_v11 = vadd.f32 %v1102_v9, %v1099_v6  ;;  %v1097_v12 = vrot.slane %v1096_v7, 1  ;;  %p1304_p8 = por %p1303_p7, %p1302_p6 }
 0x1df   :  { %v1111_v13 = vadd.f32 %v1110_v10, %v1109_v8  ;;  %v1104_v14 = vrot.slane %v1103_v11, 2  ;;  %v1098_v17 = vadd.f32 %v1097_v12, %v1096_v7  ;;  %p1305_p9 = pnand %p1304_p8, %p1298_p5 }
 0x1e1   :  { %v1112_v15 = vrot.slane %v1111_v13, 1  ;;  %v1105_v16 = vadd.f32 %v1104_v14, %v1103_v11  ;;  %v1101_v24 = vsub.f32 1.0, %v1098_v17 }
 0x1e3   :  { %v1106_v18 = vrot.slane %v1105_v16, 1  ;;  %v1113_v19 = vadd.f32 %v1112_v15, %v1111_v13 }
 0x1e5   :  { %v1107_v23 = vadd.f32 %v1106_v18, %v1105_v16 }
 0x1e7   :  { %v1117_v25 = vsel %vm1116_vm4, %v1113_v19, %v1107_v23 }
 0x1e8   :  { %v1119_v26 = vadd.f32 %v1117_v25, %v1101_v24 }
 0x1ea   :  { %1120 = vst [vmem:[#allocation4] sm:$0x3] %v1119_v26 }
 0x1eb   :  { %1308 = shalt.err (!%p1305_p9)
}
 0x1ec   :  { %1140 = dma.vmem_to_hbm [thread:$0]  %s1138_s8, 32, %s1420_s5, [#allocation5]  }
 0x1ed   :  { %1317 = dma.done.wait [#allocation3], 32  }
 0x1ee   :  { %1318 = vsyncadd [#allocation3], 4294967264 }
 0x1ef   :  { %1319 = dma.done.wait [#allocation5], 32  }
 0x1f0   :  { %1320 = vsyncadd [#allocation5], 4294967264 }
 0x1f1   :  { %1147 = vsyncpa [#allocation3], 1 }
 0x1f2   :  { %1148 = vsyncpa [#allocation5], 1 }

</bundles_post_ra>
